<compile_context>
chip_gen: v6e
topology: v6e:2x2x1
jax: 0.10.0
libtpu: 0.0.40
codegen_flags: <defaults>
</compile_context>

<pallas_src>
import math

import jax
import jax.numpy as jnp
from jax.experimental import pallas as pl
from jax.experimental.pallas import tpu as pltpu


def _cdiv(a, b):
    return -(-a // b)


def _round_up(a, b):
    return _cdiv(a, b) * b


def _make_kernel(*, valid_elems, g, block_rows, n_blocks, nb_per_core, needs_mask):
    inv_sqrt2 = 1.0 / math.sqrt(2.0)
    L = 128

    def kernel(z_ref, means_ref, logsc_ref, out_ref):
        c = pl.program_id(0)            # "parallel" axis: TensorCore shard (v7x)
        j = pl.program_id(1)            # "arbitrary" axis: row-block reduction
        gb = c * nb_per_core + j        # global row-block index

        # Output block index is (c, 0): resident per-core accumulator along j.
        @pl.when(j == 0)
        def _init():
            out_ref[...] = jnp.zeros_like(out_ref)

        z = z_ref[...].astype(jnp.float32)      # (block_rows, 128); bf16 input ok
        means = means_ref[...]                  # (g, 128)
        log_scales = logsc_ref[...]             # (g, 128)

        # 1 / max(exp(ls), 1e-9) == min(exp(-ls), 1e9): one EUP exp, no VPU divide.
        inv_scales = jnp.minimum(jnp.exp(-log_scales), 1e9)
        k = inv_scales * inv_sqrt2              # fold 1/sqrt(2) at (g, 128) cost

        if g > 1:
            # D does not divide 128: the parameter pattern repeats every g rows;
            # block_rows % g == 0 so the tile stays aligned with the block.
            means = jnp.tile(means, (block_rows // g, 1))
            k = jnp.tile(k, (block_rows // g, 1))

        centered = z - means
        u = (centered + 0.5) * k
        l = (centered - 0.5) * k

        # 0.5*(erf(u) - erf(l)) == CDF(upper) - CDF(lower); clamp as the module does.
        probs = jnp.maximum(0.5 * (jax.lax.erf(u) - jax.lax.erf(l)), 1e-9)
        logp = jnp.log(probs)   # natural log; /ln2 + mean + negate folded outside

        def accumulate(vals):
            # Lane/sublane-parallel accumulation: block_rows//8 VALU adds into the
            # resident (8,128) block; no per-step cross-lane XLU reduce.
            out_ref[...] += jnp.sum(vals.reshape(block_rows // 8, 8, L), axis=0)

        if needs_mask:
            @pl.when(gb < n_blocks - 1)
            def _interior():            # interior blocks never hold padding
                accumulate(logp)

            @pl.when(gb == n_blocks - 1)
            def _last():                # only the last block can hold padding
                row = jax.lax.broadcasted_iota(jnp.int32, logp.shape, 0)
                lane = jax.lax.broadcasted_iota(jnp.int32, logp.shape, 1)
                # int32 flat index is fine for B*D < 2^31.
                flat = (gb * block_rows + row) * L + lane
                accumulate(jnp.where(flat < valid_elems, logp, 0.0))
            # (gb >= n_blocks: duplicated block on the spare core -> no accumulate)
        else:
            @pl.when(gb < n_blocks)     # skip duplicated blocks on the spare core
            def _full():
                accumulate(logp)

    return kernel


def entropy_bottleneck(z_q, means, log_scales, *, max_block_rows=2048, num_cores=2):
    """z_q: (B, D); means, log_scales: (D,). Returns scalar entropy (bits/sample)."""
    B, D = z_q.shape
    L = 128
    n_elems = B * D

    lcm_dl = (D * L) // math.gcd(D, L)
    g = lcm_dl // L                                 # parameter rows per repeat group
    row_quant = (8 * g) // math.gcd(8, g)           # lcm(8, g)

    # Lane-dense repack: flatten (B, D) -> (rows, 128).  Free (pure reshape)
    # when B*D % 128 == 0; otherwise only a tiny tail pad.
    z_flat = z_q.reshape(-1)
    pad = (-n_elems) % L
    rows = (n_elems + pad) // L
    if rows < row_quant:                            # tiny inputs only
        pad += (row_quant - rows) * L
        rows = row_quant
    if pad:
        z_flat = jnp.pad(z_flat, (0, pad))
    z2 = z_flat.reshape(rows, L)                    # dtype preserved (bf16 ok)

    # Big blocks amortize ~0.35us/step; multiple of lcm(8, g); never larger than
    # the array (the last block may still be partial -> in-kernel mask).
    block_rows = min(_round_up(max_block_rows, row_quant),
                     (rows // row_quant) * row_quant)
    n_blocks = _cdiv(rows, block_rows)
    nb_per_core = _cdiv(n_blocks, num_cores)
    needs_mask = (n_blocks * block_rows * L) != n_elems

    reps = lcm_dl // D
    means_row = jnp.tile(means.astype(jnp.float32), reps).reshape(g, L)
    logsc_row = jnp.tile(log_scales.astype(jnp.float32), reps).reshape(g, L)

    kernel = _make_kernel(valid_elems=n_elems, g=g, block_rows=block_rows,
                          n_blocks=n_blocks, nb_per_core=nb_per_core,
                          needs_mask=needs_mask)

    partials = pl.pallas_call(
        kernel,
        out_shape=jax.ShapeDtypeStruct((num_cores * 8, L), jnp.float32),
        grid_spec=pltpu.PrefetchScalarGridSpec(
            num_scalar_prefetch=0,
            grid=(num_cores, nb_per_core),
            in_specs=[
                # Clamp so the spare core's extra iterations (when n_blocks is
                # odd) still DMA a valid block; their accumulation is skipped.
                pl.BlockSpec(
                    (block_rows, L),
                    lambda c, j: (jnp.minimum(c * nb_per_core + j, n_blocks - 1), 0)),
                pl.BlockSpec((g, L), lambda c, j: (0, 0)),
                pl.BlockSpec((g, L), lambda c, j: (0, 0)),
            ],
            out_specs=pl.BlockSpec((8, L), lambda c, j: (c, 0)),
        ),
        compiler_params=pltpu.CompilerParams(
            # Leading axis shards row-blocks across TensorCores (v7x megacore);
            # trailing axis is the batch reduction into the resident block.
            dimension_semantics=("parallel", "arbitrary"),
        ),
    )(z2, means_row, logsc_row)

    # Fold log2 conversion, the mean over batch and the negate into one scale,
    # applied once to the tiny (num_cores*8, 128) partial-sum array.
    final_scale = -1.0 / (B * math.log(2.0))
    return jnp.sum(partials) * final_scale


def _reference(z_q, means, log_scales):
    """Direct transcription of the PyTorch module's forward (f32)."""
    scales = jnp.maximum(jnp.exp(log_scales), 1e-9)
    centered = z_q - means
    upper = (centered + 0.5) / scales
    lower = (centered - 0.5) / scales
    cdf_u = 0.5 * (1.0 + jax.lax.erf(upper / math.sqrt(2.0)))
    cdf_l = 0.5 * (1.0 + jax.lax.erf(lower / math.sqrt(2.0)))
    probs = jnp.maximum(cdf_u - cdf_l, 1e-9)
    return -jnp.mean(jnp.sum(jnp.log2(probs), axis=1))


if __name__ == "__main__":
    # D=32 packs 4 samples per 128-lane row; B=10 is deliberately not a multiple
    # of that (and of the 8-row sublane quantum) so the in-kernel padding mask,
    # the spare-core skip path and the partial-block handling are all exercised.
    B, D = 10, 32

    key = jax.random.PRNGKey(0)
    kz, km, ks = jax.random.split(key, 3)

    # Quantized latents: small integers, as a trained quantized bottleneck produces.
    z_q = jnp.clip(jnp.round(jax.random.normal(kz, (B, D), dtype=jnp.float32)), -2.0, 2.0)
    means = 0.05 * jax.random.normal(km, (D,), dtype=jnp.float32)
    log_scales = 0.05 * jax.random.normal(ks, (D,), dtype=jnp.float32)

    ent = jax.block_until_ready(entropy_bottleneck(z_q, means, log_scales))

    ref = _reference(z_q, means, log_scales)
    # Tolerance accounts for the algebraically identical erf-difference
    # reformulation and the reordered (lane-parallel) reduction under f32.
    assert jnp.allclose(ent, ref, rtol=1e-4, atol=1e-4), (ent, ref)

    print("KERNEL_OK")
</pallas_src>

<mosaic_0001>
module attributes {stable_mosaic.version = 11 : i64} {
  func.func @kernel(%arg0: i32, %arg1: i32, %arg2: memref<8x128xf32, #tpu.memory_space<vmem>>, %arg3: memref<1x128xf32, #tpu.memory_space<vmem>>, %arg4: memref<1x128xf32, #tpu.memory_space<vmem>>, %arg5: memref<8x128xf32, #tpu.memory_space<vmem>>) attributes {dimension_semantics = [#tpu.dimension_semantics<parallel>, #tpu.dimension_semantics<arbitrary>], iteration_bounds = array<i64: 2, 1>, scalar_prefetch = 0 : i64, scratch_operands = 0 : i64, tpu.core_type = #tpu.core_type<tc>, window_params = [{transform_indices = @transform_0, window_bounds = array<i64: 8, 128>}, {pipeline_mode = #tpu.pipeline_mode<synchronous>, transform_indices = @transform_1, window_bounds = array<i64: 1, 128>}, {pipeline_mode = #tpu.pipeline_mode<synchronous>, transform_indices = @transform_2, window_bounds = array<i64: 1, 128>}, {transform_indices = @transform_3, window_bounds = array<i64: 8, 128>}]} {
    %c1_i32 = arith.constant 1 : i32
    %0 = arith.muli %arg0, %c1_i32 : i32
    %1 = arith.addi %0, %arg1 : i32
    %c0_i32 = arith.constant 0 : i32
    %2 = arith.cmpi eq, %arg1, %c0_i32 : i32
    %3 = arith.extui %2 : i1 to i32
    %c0_i32_0 = arith.constant 0 : i32
    %4 = arith.cmpi ne, %3, %c0_i32_0 : i32
    scf.if %4 {
      %cst_16 = arith.constant 0.000000e+00 : f32
      %39 = vector.broadcast %cst_16 : f32 to vector<8x128xf32>
      %c0_17 = arith.constant 0 : index
      %c0_18 = arith.constant 0 : index
      %40 = vector.load %arg5[%c0_17, %c0_18] : memref<8x128xf32, #tpu.memory_space<vmem>>, vector<8x128xf32>
      tpu.vector_store %arg5[%c0_17, %c0_18], %39 {strides = array<i32>} : memref<8x128xf32, #tpu.memory_space<vmem>>, vector<8x128xf32>,
    } else {
    }
    %c0 = arith.constant 0 : index
    %c0_1 = arith.constant 0 : index
    %5 = vector.load %arg2[%c0, %c0_1] : memref<8x128xf32, #tpu.memory_space<vmem>>, vector<8x128xf32>
    %c0_2 = arith.constant 0 : index
    %c0_3 = arith.constant 0 : index
    %6 = vector.load %arg3[%c0_2, %c0_3] : memref<1x128xf32, #tpu.memory_space<vmem>>, vector<1x128xf32>
    %c0_4 = arith.constant 0 : index
    %c0_5 = arith.constant 0 : index
    %7 = vector.load %arg4[%c0_4, %c0_5] : memref<1x128xf32, #tpu.memory_space<vmem>>, vector<1x128xf32>
    %cst = arith.constant 0.000000e+00 : f32
    %8 = vector.broadcast %cst : f32 to vector<1x128xf32>
    %9 = arith.subf %8, %7 : vector<1x128xf32>
    %10 = math.exp %9 : vector<1x128xf32>
    %cst_6 = arith.constant 1.000000e+09 : f32
    %11 = vector.broadcast %cst_6 : f32 to vector<1x128xf32>
    %12 = arith.minimumf %10, %11 : vector<1x128xf32>
    %cst_7 = arith.constant 0.707106769 : f32
    %13 = vector.broadcast %cst_7 : f32 to vector<1x128xf32>
    %14 = arith.mulf %12, %13 : vector<1x128xf32>
    %15 = vector.broadcast %6 : vector<1x128xf32> to vector<8x128xf32>
    %16 = arith.subf %5, %15 : vector<8x128xf32>
    %cst_8 = arith.constant 5.000000e-01 : f32
    %17 = vector.broadcast %cst_8 : f32 to vector<8x128xf32>
    %18 = arith.addf %16, %17 : vector<8x128xf32>
    %19 = vector.broadcast %14 : vector<1x128xf32> to vector<8x128xf32>
    %20 = arith.mulf %18, %19 : vector<8x128xf32>
    %cst_9 = arith.constant 5.000000e-01 : f32
    %21 = vector.broadcast %cst_9 : f32 to vector<8x128xf32>
    %22 = arith.subf %16, %21 : vector<8x128xf32>
    %23 = vector.broadcast %14 : vector<1x128xf32> to vector<8x128xf32>
    %24 = arith.mulf %22, %23 : vector<8x128xf32>
    %25 = math.erf %20 : vector<8x128xf32>
    %26 = math.erf %24 : vector<8x128xf32>
    %27 = arith.subf %25, %26 : vector<8x128xf32>
    %cst_10 = arith.constant 5.000000e-01 : f32
    %28 = vector.broadcast %cst_10 : f32 to vector<8x128xf32>
    %29 = arith.mulf %28, %27 : vector<8x128xf32>
    %cst_11 = arith.constant 9.99999971E-10 : f32
    %30 = vector.broadcast %cst_11 : f32 to vector<8x128xf32>
    %31 = arith.maximumf %29, %30 : vector<8x128xf32>
    %32 = math.log %31 : vector<8x128xf32>
    %c0_i32_12 = arith.constant 0 : i32
    %33 = arith.cmpi slt, %1, %c0_i32_12 : i32
    %34 = arith.extui %33 : i1 to i32
    %c0_i32_13 = arith.constant 0 : i32
    %35 = arith.cmpi ne, %34, %c0_i32_13 : i32
    scf.if %35 {
      %c0_16 = arith.constant 0 : index
      %c0_17 = arith.constant 0 : index
      %39 = vector.load %arg5[%c0_16, %c0_17] : memref<8x128xf32, #tpu.memory_space<vmem>>, vector<8x128xf32>
      %40 = vector.shape_cast %32 : vector<8x128xf32> to vector<1x8x128xf32>
      %cst_18 = arith.constant dense<0.000000e+00> : vector<8x128xf32>
      %41 = vector.multi_reduction <add>, %40, %cst_18 [0] : vector<1x8x128xf32> to vector<8x128xf32>
      %42 = arith.addf %39, %41 : vector<8x128xf32>
      %c0_19 = arith.constant 0 : index
      %c0_20 = arith.constant 0 : index
      %43 = vector.load %arg5[%c0_19, %c0_20] : memref<8x128xf32, #tpu.memory_space<vmem>>, vector<8x128xf32>
      tpu.vector_store %arg5[%c0_19, %c0_20], %42 {strides = array<i32>} : memref<8x128xf32, #tpu.memory_space<vmem>>, vector<8x128xf32>,
    } else {
    }
    %c0_i32_14 = arith.constant 0 : i32
    %36 = arith.cmpi eq, %1, %c0_i32_14 : i32
    %37 = arith.extui %36 : i1 to i32
    %c0_i32_15 = arith.constant 0 : i32
    %38 = arith.cmpi ne, %37, %c0_i32_15 : i32
    scf.if %38 {
      %39 = tpu.iota {dimensions = array<i32: 0>} : vector<8x128xi32>
      %40 = tpu.iota {dimensions = array<i32: 1>} : vector<8x128xi32>
      %c8_i32 = arith.constant 8 : i32
      %41 = arith.muli %1, %c8_i32 : i32
      %42 = vector.broadcast %41 : i32 to vector<8x128xi32>
      %43 = arith.addi %42, %39 : vector<8x128xi32>
      %c128_i32 = arith.constant 128 : i32
      %44 = vector.broadcast %c128_i32 : i32 to vector<8x128xi32>
      %45 = arith.muli %43, %44 : vector<8x128xi32>
      %46 = arith.addi %45, %40 : vector<8x128xi32>
      %c320_i32 = arith.constant 320 : i32
      %47 = vector.broadcast %c320_i32 : i32 to vector<8x128xi32>
      %48 = arith.cmpi slt, %46, %47 : vector<8x128xi32>
      %cst_16 = arith.constant 0.000000e+00 : f32
      %49 = vector.broadcast %cst_16 : f32 to vector<8x128xf32>
      %50 = arith.select %48, %32, %49 : vector<8x128xi1>, vector<8x128xf32>
      %c0_17 = arith.constant 0 : index
      %c0_18 = arith.constant 0 : index
      %51 = vector.load %arg5[%c0_17, %c0_18] : memref<8x128xf32, #tpu.memory_space<vmem>>, vector<8x128xf32>
      %52 = vector.shape_cast %50 : vector<8x128xf32> to vector<1x8x128xf32>
      %cst_19 = arith.constant dense<0.000000e+00> : vector<8x128xf32>
      %53 = vector.multi_reduction <add>, %52, %cst_19 [0] : vector<1x8x128xf32> to vector<8x128xf32>
      %54 = arith.addf %51, %53 : vector<8x128xf32>
      %c0_20 = arith.constant 0 : index
      %c0_21 = arith.constant 0 : index
      %55 = vector.load %arg5[%c0_20, %c0_21] : memref<8x128xf32, #tpu.memory_space<vmem>>, vector<8x128xf32>
      tpu.vector_store %arg5[%c0_20, %c0_21], %54 {strides = array<i32>} : memref<8x128xf32, #tpu.memory_space<vmem>>, vector<8x128xf32>,
    } else {
    }
    return
  }
  func.func @transform_0(%arg0: i32, %arg1: i32) -> (i32, i32) {
    %c1_i32 = arith.constant 1 : i32
    %0 = arith.muli %arg0, %c1_i32 : i32
    %1 = arith.addi %0, %arg1 : i32
    %c0_i32 = arith.constant 0 : i32
    %2 = arith.minsi %1, %c0_i32 : i32
    %c0_i32_0 = arith.constant 0 : i32
    %c0_i32_1 = arith.constant 0 : i32
    return %2, %c0_i32_0 : i32, i32
  }
  func.func @transform_1(%arg0: i32, %arg1: i32) -> (i32, i32) {
    %c0_i32 = arith.constant 0 : i32
    %c0_i32_0 = arith.constant 0 : i32
    %c0_i32_1 = arith.constant 0 : i32
    return %c0_i32, %c0_i32_0 : i32, i32
  }
  func.func @transform_2(%arg0: i32, %arg1: i32) -> (i32, i32) {
    %c0_i32 = arith.constant 0 : i32
    %c0_i32_0 = arith.constant 0 : i32
    %c0_i32_1 = arith.constant 0 : i32
    return %c0_i32, %c0_i32_0 : i32, i32
  }
  func.func @transform_3(%arg0: i32, %arg1: i32) -> (i32, i32) {
    %c0_i32 = arith.constant 0 : i32
    %c0_i32_0 = arith.constant 0 : i32
    return %arg0, %c0_i32 : i32, i32
  }
}

</mosaic_0001>

<bundles_post_ra>
// kernel: tpu_custom_call.1
= control target key start
LH: loop header
LB: loop body
LE: loop exit
PB: predicated region body
PF: predicated region fallthrough
CT: control target
= control target key end

     0   :  { %8 = vsyncpa [#allocation3], 0  ;;  %s804_s0 = inlined_call_operand.hbm [shape: f32[8,128], index: 0, kind: input, shape index: {}]   ;;  %s805_s1 = inlined_call_operand.vmem [shape: f32[1,128], index: 1, kind: input, shape index: {}]   ;;  %s806_s2 = inlined_call_operand.vmem [shape: f32[1,128], index: 2, kind: input, shape index: {}]   ;;  %s807_s3 = inlined_call_operand.hbm [shape: f32[16,128], index: 3, kind: output, shape index: {}]  }
   0x1   :  { %10 = vsyncpa [#allocation3 + $0x1], 0 }
   0x2   :  { %11 = vsyncpa [#allocation4], 0 }
   0x3   :  { %13 = vsyncpa [#allocation4 + $0x1], 0  ;;  %s634_s12 = smov 0   ;;  %s636_s13 = smov 0  }
   0x4   :  { %s638_s14 = smov 0   ;;  %s640_s15 = smov 0  }
   0x5   :  { %s642_s16 = smov 0   ;;  %s644_s17 = smov 0  }
   0x6   :  { %s646_s18 = smov 0   ;;  %s648_s19 = smov 0  }
   0x7 LB: > { %s367_s20 = sadd.s32 4294967295, %s609_s19   ;;  %s368_s21 = sadd.s32 4294967294, %s609_s19   ;;  %s609_s19 = sphi %s648_s19, %s19_s19   ;;  %s605_s18 = sphi %s646_s18, %s826_s18   ;;  %s601_s17 = sphi %s644_s17, %s825_s17   ;;  %s597_s16 = sphi %s642_s16, %s794_s16   ;;  %s593_s15 = sphi %s640_s15, %s824_s15   ;;  %s589_s14 = sphi %s638_s14, %s823_s14   ;;  %s585_s13 = sphi %s636_s13, %s822_s13   ;;  %s581_s12 = sphi %s634_s12, %s821_s12  }
   0x8   : > { %s31_s22 = sadd.s32 1, %s605_s18  ;;  %p578_p1 = scmp.ne.s32.totalorder %s597_s16, 0 }
   0x9   : > { %p33_p0 = scmp.ge.s32.totalorder %s31_s22, 2  ;;  %p52_p2 = scmp.eq.s32.totalorder %s609_s19, 0 }
   0xa   : > { %p57_p3 = scmp.ne.s32.totalorder %s597_s16, %s593_s15  ;;  %p58_p5 = scmp.eq.s32.totalorder %s367_s20, 0 }
   0xb   : > { %s828_s22 = smov (%p33_p0, %s31_s22), 0  ;;  %p680_p4 = por %p578_p1, %p52_p2 }
   0xc   : > { %p684_p6 = por %p58_p5, %p57_p3  ;;  %s109_s25 = ssub.s32 %s605_s18, %s828_s22 }
   0xd   : > { %p110_p7 = scmp.eq.s32.totalorder %s109_s25, 0  ;;  %s112_s26 = sadd.s32 1, %s589_s14 }
   0xe   : > { %s811_s24 = scalar_select %p684_p6, 1, 0 }
   0xf   : > { %s692_s27 = scalar_select %p110_p7, %s589_s14, %s112_s26  }
  0x10   : > { %p122_p8 = scmp.ne.s32.totalorder %s589_s14, %s585_s13  ;;  %p123_p9 = scmp.eq.s32.totalorder %s367_s20, 1 }
  0x11   : > { %p128_p10 = scmp.ne.s32.totalorder %s585_s13, %s581_s12  ;;  %p129_p11 = scmp.eq.s32.totalorder %s368_s21, 1 }
  0x12   : > { %p698_p12 = por %p123_p9, %p122_p8  ;;  %p397_p1 = scmp.lt.s32.totalorder %s609_s19, 2 }
  0x13   : > { %p703_p0 = por %p129_p11, %p128_p10  ;;  %s611_s30 = smov [#allocation2]  }
  0x14   : > { %s812_s28 = scalar_select %p698_p12, 1, 0 }
  0x15   : > { %s813_s29 = scalar_select %p703_p0, 1, 0 }
  0x16   : > { %s169_s4 = sshll.u32 %s611_s30, 4  ;;  %p710_p2 = pnand %p397_p1, %p680_p4  ;;  %s170_s4 = int_to_ptr.vmem [resolvable:$true] %s169_s4 }
  0x17   : > { %s480_s8 = scalar_lea.hbm %s804_s0, 128 }
  0x18   : > { %p481_p7 = scmp.ne.s32.totalorder %s804_s0, %s480_s8  ;;  %p482_p8 = pneg %p710_p2 }
  0x19   : > { %p487_p4 = scmp.lt.s32.totalorder %s480_s8, %s480_s8 }
  0x1a   : > { %p483_p9 = pnand %p482_p8, %p481_p7 }
  0x1c   : > { %p484_p10 = pneg %p483_p9 }
  0x1e   : > { %p489_p11 = pnand %p487_p4, %p484_p10 }
  0x20   : > { %492 = shalt.err (!%p489_p11)
}
  0x21   : > { %s493_s11 = scalar_lea.vmem %s170_s4, 128  ;;  %s500_s15 = scalar_lea.vmem %s170_s4, 256 }
  0x22   : > { %p494_p1 = scmp.ne.s32.totalorder %s170_s4, %s493_s11  ;;  %p501_p5 = scmp.lt.s32.totalorder %s170_s4, %s170_s4 }
  0x23   : > { %p502_p0 = scmp.lt.s32.totalorder %s500_s15, %s493_s11 }
  0x24   : > { %p496_p13 = pnand %p494_p1, %p482_p8 }
  0x25   : > { %p503_p12 = por %p502_p0, %p501_p5 }
  0x26   : > { %p497_p3 = pneg %p496_p13 }
  0x28   : > { %p504_p6 = pnand %p503_p12, %p497_p3 }
  0x2a   : > { %507 = shalt.err (!%p504_p6)
}
  0x2b   : > { %392 = dma.hbm_to_vmem [thread:$0]  (!%p710_p2), %s804_s0, 128, %s170_s4, [#allocation3]  }
  0x2c   : > { %p815_p7 = scmp.lt.s32.totalorder %s609_s19, 3  ;;  %p816_p9 = scmp.ge.s32.totalorder %s609_s19, 1 }
  0x2e   : > { %p175_p10 = pnand %p816_p9, %p815_p7 }
  0x2f   : > { %s180_s23 = sand.u32 (!%p175_p10), 1, %s597_s16   ;;  %p817_p12 = scmp.ne.s32.totalorder (!%p175_p10), %s811_s24, 0 }
  0x30   : > { %178 = sbr.rel (%p175_p10) target bundleno = 164 (0xa4), region = 32  ;;  %s374_s25 = sshll.u32 (!%p175_p10), %s180_s23, 3 }
  0x31   : > { %s181_s26 = scalar_lea.sflag (!%p175_p10), [#allocation3], %s180_s23  ;;  %s184_s30 = scalar_lea.vmem (!%p175_p10), [#allocation2], %s374_s25 }
  0x35   : > { %571 = dma.done.wait (%p817_p12), %s181_s26, 128  }
  0x36   : > { %573 = vsyncadd (%p817_p12), %s181_s26, 4294967168  ;;  %s204_s5 = sand.u32 1, %s585_s13   ;;  %v612_v0 = vmov 0.0   ;;  %v218_v1 = vld [vmem:[%s806_s2] sm:$0x1]  ;;  %v233_v4 = vlaneseq  ;;  %p378_p6 = scmp.ge.s32.totalorder %s601_s17, 0 }
  0x37   : > { %s375_s4 = sshll.u32 %s204_s5, 3  ;;  %v219_v2 = vsub.f32 0.0, %v218_v1  ;;  %v216_v5 = vld [vmem:[%s184_s30] sm:$0xff] }
  0x38   : > { %s741_s6 = scalar_lea.vmem [#allocation5], %s375_s4  ;;  %v376_v6 = vld [vmem:[%s805_s1] ss:$0 sm:$0xff]  ;;  %v234_v7 = vshrl.u32 %v233_v4, 7 }
  0x39   : > { %215 = vst [vmem:[%s741_s6] sm:$0xff] %v612_v0  ;;  %v220_v3 = vmul.f32 1.442695, %v219_v2  ;;  %v230_v8 = vsub.f32 %v216_v5, %v376_v6 }
  0x3a   : > { %v235_v11 = vsub.s32 0, %v234_v7 }
  0x3b   : > { %472 = vpow2.f32 %v220_v3  ;;  %v231_v13 = vadd.f32 0.5, %v230_v8  ;;  %v377_v14 = vadd.f32 -0.5, %v230_v8 }
  0x48   : > { %v473_v9 = vpop.eup %472 }
  0x49   : > { %v222_v10 = vmin.f32 %v473_v9, 1e+09 }
  0x4b   : > { %v223_v12 = vmul.f32 0.70710677, %v222_v10 }
  0x4d   : > { %v236_v15 = vrot.slane %v223_v12, %v235_v11 }
  0x4f   : > { %v238_v16 = vmul.f32 %v236_v15, %v231_v13  ;;  %v240_v17 = vmul.f32 %v377_v14, %v236_v15 }
  0x51   : > { %474 = verf.f32 %v238_v16 }
  0x52   : > { %476 = verf.f32 %v240_v17 }
  0x5e   : > { %v475_v18 = vpop.eup %474 }
  0x5f   : > { %v477_v19 = vpop.eup %476 }
  0x60   : > { %v243_v20 = vsub.f32 %v475_v18, %v477_v19 }
  0x62   : > { %v244_v21 = vmul.f32 0.5, %v243_v20 }
  0x64   : > { %v245_v22 = vmax.f32 %v244_v21, 1e-09 }
  0x66   : > { %478 = vlog2.f32 %v245_v22 }
  0x70   : > { %251 = sbr.rel (%p378_p6) target bundleno = 121 (0x79), region = 44 }
  0x73   : > { %v479_v23 = vpop.eup %478 }
  0x74   : > { %v247_v24 = vmul.f32 0.6931472, %v479_v23 }
  0x75   : > { %v252_v25 = vld [vmem:[%s741_s6] sm:$0xff] }
  0x76   : > { %v254_v26 = vadd.f32 %v252_v25, %v247_v24 }
  0x78   : > { %255 = vst [vmem:[%s741_s6] sm:$0xff] %v254_v26 }
  0x79 PF: > { %p379_p13 = scmp.ne.s32.totalorder %s601_s17, 0 }
  0x7a   : > { %s380_s10 = sshll.u32 (!%p379_p13), %s601_s17, 3 }
  0x7b   : > { %259 = sbr.rel (%p379_p13) target bundleno = 140 (0x8c), region = 48 }
  0x80   : > { %v265_v27 = vstv %s380_s10  ;;  %v263_v28 = vand.u32 127, %v233_v4  ;;  %v271_v32 = vld [vmem:[%s741_s6] sm:$0xff] }
  0x81   : > { %v266_v29 = vadd.s32 %v265_v27, %v234_v7 }
  0x83   : > { %v267_v30 = vmul.u32 128, %v266_v29 }
  0x85   : > { %v268_v31 = vadd.s32 %v267_v30, %v263_v28 }
  0x87   : > { %vm269_vm0 = vcmp.lt.s32.totalorder %v268_v31, 320 }
  0x88   : > { %v270_v33 = vsel %vm269_vm0, %v247_v24, 0.0 }
  0x89   : > { %v273_v34 = vadd.f32 %v271_v32, %v270_v33 }
  0x8b   : > { %274 = vst [vmem:[%s741_s6] sm:$0xff] %v273_v34 }
  0x8c PF: > { %s382_s11 = sshll.u32 %s601_s17, 7  ;;  %s289_s23 = sshll.u32 %s741_s6, 4  ;;  %s290_s23 = int_to_ptr.vmem [resolvable:$true] %s289_s23 }
  0x8d   : > { %s287_s21 = scalar_lea.hbm %s807_s3, %s382_s11  ;;  %s276_s25 = scalar_lea.sflag [#allocation4], %s204_s5 }
  0x8e   : > { %s508_s26 = scalar_lea.vmem %s290_s23, 128  ;;  %p818_p2 = scmp.ne.s32.totalorder %s812_s28, 0 }
  0x8f   : > { %p509_p0 = scmp.ne.s32.totalorder %s290_s23, %s508_s26  ;;  %s613_s30 = smov [#allocation5]  }
  0x90   : > { %s512_s4 = sshll.u32 %s613_s30, 4  ;;  %s513_s4 = int_to_ptr.vmem [resolvable:$false] %s512_s4 }
  0x91   : > { %p510_p3 = pnand %p509_p0, %p818_p2  ;;  %s514_s7 = scalar_lea.vmem %s513_s4, 256 }
  0x92   : > { %p515_p8 = scmp.lt.s32.totalorder %s290_s23, %s513_s4  ;;  %p516_p4 = scmp.lt.s32.totalorder %s514_s7, %s508_s26 }
  0x93   : > { %p511_p5 = pneg %p510_p3 }
  0x94   : > { %p517_p11 = por %p516_p4, %p515_p8 }
  0x96   : > { %p518_p1 = pnand %p517_p11, %p511_p5 }
  0x98   : > { %521 = shalt.err (!%p518_p1)
}
  0x99   : > { %s522_s17 = scalar_lea.hbm %s287_s21, 128  ;;  %s526_s8 = scalar_lea.hbm %s807_s3, 256 }
  0x9a   : > { %p523_p7 = scmp.ne.s32.totalorder %s287_s21, %s522_s17  ;;  %p527_p12 = scmp.lt.s32.totalorder %s287_s21, %s807_s3 }
  0x9b   : > { %p528_p6 = scmp.lt.s32.totalorder %s526_s8, %s522_s17 }
  0x9c   : > { %p524_p9 = pnand %p523_p7, %p818_p2 }
  0x9d   : > { %p529_p13 = por %p528_p6, %p527_p12 }
  0x9e   : > { %p525_p10 = pneg %p524_p9 }
  0xa0   : > { %p530_p0 = pnand %p529_p13, %p525_p10 }
  0xa2   : > { %533 = shalt.err (!%p530_p0)
}
  0xa3   : > { %387 = dma.vmem_to_hbm [thread:$0]  (%p818_p2), %s290_s23, 128, %s287_s21, %s276_s25  }
  0xa4 PF: > { %s301_s10 = sand.u32 1, %s581_s12   ;;  %p819_p3 = scmp.ne.s32.totalorder %s813_s29, 0 }
  0xa5   : > { %p820_p5 = scmp.ge.s32.totalorder %s609_s19, 2  ;;  %s302_s11 = scalar_lea.sflag [#allocation4], %s301_s10 }
  0xa7   : > { %p394_p8 = pnand %p820_p5, %p819_p3 }
  0xa9   : > { %p395_p4 = pneg %p394_p8 }
  0xab   : > { %575 = dma.done.wait (%p395_p4), %s302_s11, 128  }
  0xac   : > { %577 = vsyncadd (%p395_p4), %s302_s11, 4294967168  ;;  %s19_s19 = sadd.s32 1, %s609_s19   ;;  %s821_s12 = smov %s585_s13 }
  0xad   : > { %p16_p11 = scmp.ge.s32.totalorder %s19_s19, 4   ;;  %s822_s13 = smov %s589_s14 }
  0xae   : > { %s823_s14 = smov %s692_s27  ;;  %s824_s15 = smov %s597_s16 }
  0xaf   : > { %s794_s16 = smov 0   ;;  %s825_s17 = smov %s605_s18 }
  0xb0   : > { %s826_s18 = smov %s828_s22  ;;  %18 = sbr.rel (!%p16_p11) target bundleno = 7 (0x7), region = 89 }
  0xb5   :  { %307 = vsyncpa [#allocation3], 1 }
  0xb6   :  { %309 = vsyncpa [#allocation3 + $0x1], 1 }
  0xb7   :  { %310 = vsyncpa [#allocation4], 1 }
  0xb8   :  { %312 = vsyncpa [#allocation4 + $0x1], 1 }

</bundles_post_ra>
